<compile_context>
chip_gen: v7x
topology: tpu7x:2x2x1
jax: 0.10.0
libtpu: 0.0.40
codegen_flags: <defaults>
</compile_context>

<pallas_src>
import functools

import jax
import jax.numpy as jnp
from jax.experimental import pallas as pl
from jax.experimental.pallas import tpu as pltpu

_LANE = 128
_MAX_WIDTH = 4096                  # widest lane-dense last dim we try
_FALLBACK_BLOCK_ELEMS = 128 * 1024  # 1-D path block (512 KiB f32): ~85-90% of roofline, low VMEM risk


def _gelu_kernel(x_ref, o_ref, *, approximate):
    x = x_ref[...]
    if approximate:
        # tanh-approx GELU: tanh goes to the EUP slot (nearly free). bf16-native on bf16 inputs.
        xf = x if x.dtype in (jnp.float32, jnp.bfloat16) else x.astype(jnp.float32)
        c0 = jnp.asarray(0.7978845608028654, xf.dtype)   # sqrt(2/pi)
        c1 = jnp.asarray(0.044715, xf.dtype)
        half = jnp.asarray(0.5, xf.dtype)
        one = jnp.asarray(1.0, xf.dtype)
        y = half * xf * (one + jnp.tanh(c0 * (xf + c1 * xf * xf * xf)))
    else:
        # Exact GELU: 0.5 * x * (1 + erf(x / sqrt(2))) — torch.nn.functional.gelu default.
        xf = x if x.dtype == jnp.float32 else x.astype(jnp.float32)
        y = 0.5 * xf * (1.0 + jax.lax.erf(xf * jnp.float32(0.7071067811865476)))
    o_ref[...] = y.astype(o_ref.dtype)


def _block_config():
    """(target block bytes per buffer, vmem_limit_bytes), tuned per TPU generation."""
    block_bytes = 2 * 1024 * 1024       # v5e/v6e sweet spot (measured 512/1024-row tiles ~equal)
    vmem_limit = 32 * 1024 * 1024       # lifts v5e's 16 MiB default; safe everywhere
    try:
        info = pltpu.get_tpu_info()
        vmem_cap = int(getattr(info, "vmem_capacity_bytes", 0) or 0)
        if 0 < vmem_cap <= 64 * 1024 * 1024:
            # v7x-class (64 MiB VMEM, ~3.2 TB/s HBM): bigger blocks amortize per-step overhead.
            block_bytes = 6 * 1024 * 1024   # 4 buffers double-buffered -> ~24 MiB
            vmem_limit = 40 * 1024 * 1024   # well under 64 MiB physical
    except Exception:
        pass
    return block_bytes, vmem_limit


def _pick_width(n):
    """Largest multiple of 128 that divides n exactly (<= _MAX_WIDTH), or None."""
    if n % _LANE != 0:
        return None
    k_max = min(_MAX_WIDTH // _LANE, n // _LANE)
    for k in range(k_max, 0, -1):
        w = k * _LANE
        if n % w == 0:
            return w
    return _LANE  # unreachable (k=1 always divides when n % 128 == 0)


def gelu_pallas(x, *, approximate=False):
    """Elementwise GELU on an arbitrarily-shaped array via a Pallas TPU kernel.

    Default (approximate=False) matches torch.nn.functional.gelu / the GELU module exactly.
    """
    orig_shape = x.shape
    dtype = x.dtype
    n = x.size
    if n == 0:
        return x

    itemsize = jnp.dtype(dtype).itemsize
    block_bytes, vmem_limit = _block_config()
    kernel = functools.partial(_gelu_kernel, approximate=approximate)
    cparams = pltpu.CompilerParams(
        dimension_semantics=("parallel",),
        vmem_limit_bytes=vmem_limit,
    )
    cost = pl.CostEstimate(
        flops=8 * n, transcendentals=n, bytes_accessed=2 * n * itemsize
    )

    x_flat = jnp.reshape(x, (-1,))
    width = _pick_width(n)

    if width is not None:
        # ---- Lane-dense 2-D path (zero-copy reshape). ----
        rows = n // width
        x2d = jnp.reshape(x_flat, (rows, width))

        # Sublane-packing granule for this dtype (f32:8, bf16:16, int8/fp8:32).
        row_granule = max(8, 8 * max(1, 4 // itemsize))
        target_rows = max(
            row_granule,
            (block_bytes // (width * itemsize)) // row_granule * row_granule,
        )

        if rows > target_rows:
            block_rows = target_rows  # ragged last block handled by Pallas masking
        else:
            # Small/medium arrays: split into >= 2 blocks when possible so both TensorCores
            # on 2-TC chips (v7x) get work; single full-extent block otherwise.
            half_rows = ((rows + 1) // 2 + row_granule - 1) // row_granule * row_granule
            block_rows = half_rows if 0 < half_rows < rows else rows

        grid = (pl.cdiv(rows, block_rows),)
        out2d = pl.pallas_call(
            kernel,
            out_shape=jax.ShapeDtypeStruct((rows, width), dtype),
            grid=grid,
            in_specs=[pl.BlockSpec((block_rows, width), lambda i: (i, 0))],
            out_specs=pl.BlockSpec((block_rows, width), lambda i: (i, 0)),
            compiler_params=cparams,
            cost_estimate=cost,
        )(x2d)
        return jnp.reshape(out2d, orig_shape)

    # ---- Fallback: n not divisible by 128. 1-D blocked kernel; the ragged last block is
    # masked by Pallas, so there is NO pad/concat on input and NO slice copy on output. ----
    if n <= _FALLBACK_BLOCK_ELEMS:
        block_elems = n                      # full-extent block (legal for any size)
    else:
        block_elems = _FALLBACK_BLOCK_ELEMS  # multiple of 128; last block ragged/masked
    grid = (pl.cdiv(n, block_elems),)
    out_flat = pl.pallas_call(
        kernel,
        out_shape=jax.ShapeDtypeStruct((n,), dtype),
        grid=grid,
        in_specs=[pl.BlockSpec((block_elems,), lambda i: (i,))],
        out_specs=pl.BlockSpec((block_elems,), lambda i: (i,)),
        compiler_params=cparams,
        cost_estimate=cost,
    )(x_flat)
    return jnp.reshape(out_flat, orig_shape)


if __name__ == "__main__":
    key = jax.random.PRNGKey(0)

    # NCHW activation consistent with the module's usage: batch=2, channels=4, 16x16 spatial.
    x = jax.random.normal(key, (2, 4, 16, 16), dtype=jnp.float32)
    y = gelu_pallas(x)
    jax.block_until_ready(y)

    y_ref = jax.nn.gelu(x, approximate=False)  # exact erf GELU, same as torch default
    assert y.shape == x.shape and y.dtype == x.dtype
    assert float(jnp.max(jnp.abs(y - y_ref))) < 1e-5

    # Non-128-divisible shape exercises the copy-free 1-D ragged fallback path.
    x_odd = jax.random.normal(jax.random.PRNGKey(1), (3, 7, 11), dtype=jnp.float32)
    y_odd = gelu_pallas(x_odd)
    jax.block_until_ready(y_odd)
    assert float(jnp.max(jnp.abs(y_odd - jax.nn.gelu(x_odd, approximate=False)))) < 1e-5

    print("KERNEL_OK")
</pallas_src>

<mosaic_0001>
module attributes {stable_mosaic.version = 11 : i64} {
  func.func @_gelu_kernel(%arg0: i32, %arg1: memref<1x2048xf32, #tpu.memory_space<vmem>>, %arg2: memref<1x2048xf32, #tpu.memory_space<vmem>>) attributes {dimension_semantics = [#tpu.dimension_semantics<parallel>], iteration_bounds = array<i64: 1>, scalar_prefetch = 0 : i64, scratch_operands = 0 : i64, tpu.core_type = #tpu.core_type<tc>, window_params = [{transform_indices = @transform_0, window_bounds = array<i64: 1, 2048>}, {transform_indices = @transform_1, window_bounds = array<i64: 1, 2048>}]} {
    %c0 = arith.constant 0 : index
    %c0_0 = arith.constant 0 : index
    %0 = vector.load %arg1[%c0, %c0_0] : memref<1x2048xf32, #tpu.memory_space<vmem>>, vector<1x2048xf32>
    %cst = arith.constant 5.000000e-01 : f32
    %1 = vector.broadcast %cst : f32 to vector<1x2048xf32>
    %2 = arith.mulf %1, %0 : vector<1x2048xf32>
    %cst_1 = arith.constant 0.707106769 : f32
    %3 = vector.broadcast %cst_1 : f32 to vector<1x2048xf32>
    %4 = arith.mulf %0, %3 : vector<1x2048xf32>
    %5 = math.erf %4 : vector<1x2048xf32>
    %cst_2 = arith.constant 1.000000e+00 : f32
    %6 = vector.broadcast %cst_2 : f32 to vector<1x2048xf32>
    %7 = arith.addf %6, %5 : vector<1x2048xf32>
    %8 = arith.mulf %2, %7 : vector<1x2048xf32>
    %c0_3 = arith.constant 0 : index
    %c0_4 = arith.constant 0 : index
    %9 = vector.load %arg2[%c0_3, %c0_4] : memref<1x2048xf32, #tpu.memory_space<vmem>>, vector<1x2048xf32>
    tpu.vector_store %arg2[%c0_3, %c0_4], %8 {strides = array<i32>} : memref<1x2048xf32, #tpu.memory_space<vmem>>, vector<1x2048xf32>,
    return
  }
  func.func @transform_0(%arg0: i32) -> (i32, i32) {
    %c0_i32 = arith.constant 0 : i32
    %c0_i32_0 = arith.constant 0 : i32
    return %arg0, %c0_i32 : i32, i32
  }
  func.func @transform_1(%arg0: i32) -> (i32, i32) {
    %c0_i32 = arith.constant 0 : i32
    %c0_i32_0 = arith.constant 0 : i32
    return %arg0, %c0_i32 : i32, i32
  }
}

</mosaic_0001>

<bundles_post_ra>
// kernel: tpu_custom_call.1
= control target key start
LH: loop header
LB: loop body
LE: loop exit
PB: predicated region body
PF: predicated region fallthrough
CT: control target
= control target key end

     0   :  { %6 = vsyncpa [#allocation3], 0  ;;  %s140_s0 = inlined_call_operand.hbm [shape: f32[1,2048], index: 0, kind: input, shape index: {}]   ;;  %s141_s1 = inlined_call_operand.hbm [shape: f32[1,2048], index: 1, kind: output, shape index: {}]  }
   0x1   :  { %7 = vsyncpa [#allocation4], 0  ;;  %s104_s6 = smov [#allocation2]   ;;  %s56_s10 = scalar_lea.hbm %s140_s0, 256 }
   0x2   :  { %s14_s7 = sshll.u32 %s104_s6, 4  ;;  %p57_p0 = scmp.ne.s32.totalorder %s140_s0, %s56_s10  ;;  %s15_s7 = int_to_ptr.vmem [resolvable:$true] %s14_s7 }
   0x3   :  { %p60_p1 = scmp.lt.u32.totalorder %s56_s10, %s140_s0 }
   0x5   :  { %p62_p2 = pnand %p60_p1, %p57_p0 }
   0x7   :  { %65 = shalt.err (!%p62_p2)
}
   0x8   :  { %s66_s15 = scalar_lea.vmem %s15_s7, 256  ;;  %p71_p4 = scmp.lt.s32.totalorder %s15_s7, %s15_s7 }
   0x9   :  { %p67_p3 = scmp.ne.s32.totalorder %s15_s7, %s66_s15  ;;  %p72_p5 = scmp.lt.s32.totalorder %s66_s15, %s66_s15 }
   0xb   :  { %p73_p6 = por %p72_p5, %p71_p4 }
   0xd   :  { %p74_p7 = pnand %p73_p6, %p67_p3 }
   0xf   :  { %77 = shalt.err (!%p74_p7)
}
  0x10   :  { %17 = dma.hbm_to_vmem [thread:$0]  %s140_s0, 256, %s15_s7, [#allocation3]  }
  0x11   :  { %100 = dma.done.wait [#allocation3], 256  }
  0x12   :  { %101 = vsyncadd [#allocation3], 4294967040  ;;  %v21_v0 = vld [vmem:[#allocation2] sm:$0xff]  ;;  %v22_v1 = vld [vmem:[#allocation2 + $0x8] sm:$0xff]  ;;  %s105_s18 = smov [#allocation5]  }
  0x13   :  { %v25_v2 = vmul.f32 0.70710677, %v21_v0  ;;  %v26_v3 = vmul.f32 0.70710677, %v22_v1  ;;  %v23_v4 = vmul.f32 0.5, %v21_v0  ;;  %v24_v6 = vmul.f32 0.5, %v22_v1 }
  0x14   :  { %s41_s19 = sshll.u32 %s105_s18, 4  ;;  %s42_s19 = int_to_ptr.vmem [resolvable:$true] %s41_s19 }
  0x15   :  { %52 = verf.f32 %v25_v2  ;;  %s78_s0 = scalar_lea.vmem %s42_s19, 256  ;;  %p83_p9 = scmp.lt.s32.totalorder %s42_s19, %s42_s19 }
  0x16   :  { %54 = verf.f32 %v26_v3  ;;  %p79_p8 = scmp.ne.s32.totalorder %s42_s19, %s78_s0  ;;  %p84_p10 = scmp.lt.s32.totalorder %s78_s0, %s78_s0 }
  0x18   :  { %p85_p11 = por %p84_p10, %p83_p9 }
  0x1a   :  { %p86_p12 = pnand %p85_p11, %p79_p8 }
  0x1f   :  { %v53_v5 = vpop.eup %52 }
  0x20   :  { %v55_v7 = vpop.eup %54  ;;  %v29_v8 = vadd.f32 1.0, %v53_v5 }
  0x21   :  { %v30_v9 = vadd.f32 1.0, %v55_v7 }
  0x22   :  { %v31_v10 = vmul.f32 %v29_v8, %v23_v4 }
  0x23   :  { %v32_v11 = vmul.f32 %v30_v9, %v24_v6 }
  0x24   :  { %33 = vst [vmem:[#allocation5] sm:$0xff] %v31_v10 }
  0x25   :  { %34 = vst [vmem:[#allocation5 + $0x8] sm:$0xff] %v32_v11 }
  0x26   :  { %89 = shalt.err (!%p86_p12)
}
  0x27   :  { %s90_s22 = scalar_lea.hbm %s141_s1, 256 }
  0x28   :  { %p91_p13 = scmp.ne.s32.totalorder %s141_s1, %s90_s22  ;;  %p94_p0 = scmp.lt.u32.totalorder %s90_s22, %s141_s1 }
  0x2a   :  { %p96_p1 = pnand %p94_p0, %p91_p13 }
  0x2c   :  { %99 = shalt.err (!%p96_p1)
}
  0x2d   :  { %44 = dma.vmem_to_hbm [thread:$0]  %s42_s19, 256, %s141_s1, [#allocation4]  }
  0x2e   :  { %102 = dma.done.wait [#allocation4], 256  }
  0x2f   :  { %103 = vsyncadd [#allocation4], 4294967040 }
  0x30   :  { %48 = vsyncpa [#allocation3], 1 }
  0x31   :  { %49 = vsyncpa [#allocation4], 1 }

</bundles_post_ra>
